<compile_context>
chip_gen: v7x
topology: tpu7x:2x2x1
jax: 0.10.0
libtpu: 0.0.40
codegen_flags: <defaults>
</compile_context>

<pallas_src>
import math

import jax
import jax.numpy as jnp
from jax import lax
from jax.experimental import pallas as pl
from jax.experimental.pallas import tpu as pltpu


def _round_up(x: int, m: int) -> int:
    return (x + m - 1) // m * m


def _lora_linear_kernel(x_ref, w_ref, b_ref, h_ref, bsc_ref, o_ref, acc_ref):
    k = pl.program_id(2)
    nk = pl.num_programs(2)

    # Fold the bias into the accumulator init (f32), instead of adding it in
    # the store-bound epilogue.
    @pl.when(k == 0)
    def _():
        acc_ref[...] = jnp.broadcast_to(
            b_ref[...].astype(jnp.float32), acc_ref.shape)

    # Base path: x @ W^T — contract the last dim of both operands, so W is
    # used exactly as stored (out_features, in_features); no transpose pass.
    acc_ref[...] += lax.dot_general(
        x_ref[...], w_ref[...],
        dimension_numbers=(((1,), (1,)), ((), ())),
        preferred_element_type=jnp.float32)                    # (tm, tn)

    # Epilogue at the last K step: LoRA up-projection (scaling already folded
    # into B, h precomputed outside the kernel), then one lane-dense store.
    @pl.when(k == nk - 1)
    def _():
        lora = lax.dot_general(
            h_ref[...], bsc_ref[...],
            dimension_numbers=(((1,), (1,)), ((), ())),
            preferred_element_type=jnp.float32)                # (tm, tn)
        o_ref[...] = (acc_ref[...] + lora).astype(o_ref.dtype)


def lora_linear(x, W, b, A, B, *, alpha=32.0,
                block_m=512, block_n=512, block_k=1024,
                compute_dtype=jnp.bfloat16):
    """x: (..., in_features) -> (..., out_features)."""
    out_features, in_features = W.shape
    rank = A.shape[0]
    scaling = float(alpha) / float(rank)

    orig_shape = x.shape
    M = math.prod(orig_shape[:-1]) if len(orig_shape) > 1 else 1
    x2d = x.reshape(M, in_features)

    # LoRA down-projection h = x @ A^T precomputed in f32 outside the kernel:
    # rank/N of the total FLOPs, M*rank elements of extra HBM traffic —
    # essentially free, and it unlocks megacore-parallel i AND j axes while
    # removing the per-(i,j,k) re-streaming of the padded lora_A tile.
    h2d = x2d.astype(jnp.float32) @ A.astype(jnp.float32).T    # (M, rank)

    # Tile sizes: sublane(8)/lane(128)-aligned, clamped to the padded problem.
    tm = min(block_m, _round_up(M, 8))
    tn = min(block_n, _round_up(out_features, 128))
    tk = min(block_k, _round_up(in_features, 128))

    M_pad = _round_up(M, tm)
    N_pad = _round_up(out_features, tn)
    K_pad = _round_up(in_features, tk)
    r_pad = _round_up(rank, 128)             # lane-dense LoRA intermediate

    def _pad2(a, rows, cols):
        pr, pc = rows - a.shape[0], cols - a.shape[1]
        return jnp.pad(a, ((0, pr), (0, pc))) if (pr or pc) else a

    # Zero-padding keeps every matmul exact.  Operands go to bf16 (compute
    # dtype); accumulation stays f32 inside the kernel.
    xp = _pad2(x2d, M_pad, K_pad).astype(compute_dtype)
    Wp = _pad2(W, N_pad, K_pad).astype(compute_dtype)
    hp = _pad2(h2d, M_pad, r_pad).astype(compute_dtype)
    # Fold scaling into the tiny B matrix once.
    Bs = _pad2(B.astype(jnp.float32) * scaling, N_pad, r_pad).astype(compute_dtype)
    # Bias stays f32 (tiny) — it seeds the f32 accumulator.
    b2d = _pad2(b.reshape(1, out_features).astype(jnp.float32), 1, N_pad)

    grid = (M_pad // tm, N_pad // tn, K_pad // tk)

    out_pad = pl.pallas_call(
        _lora_linear_kernel,
        out_shape=jax.ShapeDtypeStruct((M_pad, N_pad), x.dtype),
        grid_spec=pltpu.PrefetchScalarGridSpec(
            num_scalar_prefetch=0,
            grid=grid,
            in_specs=[
                pl.BlockSpec((tm, tk), lambda i, j, k: (i, k)),      # x
                pl.BlockSpec((tn, tk), lambda i, j, k: (j, k)),      # W (as stored)
                pl.BlockSpec((1, tn), lambda i, j, k: (0, j)),       # bias (f32)
                pl.BlockSpec((tm, r_pad), lambda i, j, k: (i, 0)),   # h = x @ A^T
                pl.BlockSpec((tn, r_pad), lambda i, j, k: (j, 0)),   # scaled lora_B
            ],
            out_specs=pl.BlockSpec((tm, tn), lambda i, j, k: (i, j)),
            scratch_shapes=[
                pltpu.VMEM((tm, tn), jnp.float32),   # f32 accumulator
            ],
        ),
        compiler_params=pltpu.CompilerParams(
            # No cross-j scratch reuse anymore, so both output axes can be
            # megacore-sharded; only the reduction axis k is "arbitrary".
            dimension_semantics=("parallel", "parallel", "arbitrary"),
        ),
    )(xp, Wp, b2d, hp, Bs)

    out2d = out_pad[:M, :out_features]
    return out2d.reshape(*orig_shape[:-1], out_features)


if __name__ == "__main__":
    # small shapes consistent with the module: batch=2, seq=8, hidden=32
    batch, seq = 2, 8
    in_features, out_features, rank, alpha = 32, 32, 16, 32.0

    key = jax.random.PRNGKey(0)
    kx, kw, kb, ka, kbb = jax.random.split(key, 5)

    x = jax.random.normal(kx, (batch, seq, in_features), dtype=jnp.float32)

    # frozen original nn.Linear params (deterministic synthetic init)
    w_bound = 1.0 / math.sqrt(in_features)
    W = jax.random.uniform(kw, (out_features, in_features),
                           minval=-w_bound, maxval=w_bound, dtype=jnp.float32)
    b = jax.random.uniform(kb, (out_features,),
                           minval=-w_bound, maxval=w_bound, dtype=jnp.float32)

    # LoRA params. lora_A ~ kaiming_uniform(a=sqrt(5)) -> U(-1/sqrt(K), 1/sqrt(K)).
    # lora_B is zero-init in the module; use a small nonzero init here so the
    # low-rank path is actually exercised numerically.
    a_bound = 1.0 / math.sqrt(in_features)
    A = jax.random.uniform(ka, (rank, in_features),
                           minval=-a_bound, maxval=a_bound, dtype=jnp.float32)
    B = 0.01 * jax.random.normal(kbb, (out_features, rank), dtype=jnp.float32)

    out = lora_linear(x, W, b, A, B, alpha=alpha)
    out = jax.block_until_ready(out)

    # pure-JAX f32 reference check (kernel runs bf16 operands + f32 accumulate,
    # so the tolerance reflects bf16 operand rounding).
    scaling = alpha / rank
    ref = x @ W.T + b + ((x @ A.T) @ B.T) * scaling
    assert out.shape == (batch, seq, out_features)
    assert jnp.allclose(out, ref, atol=5e-2, rtol=5e-2), "mismatch vs reference"

    print("KERNEL_OK")
</pallas_src>

<mosaic_0001>
module attributes {stable_mosaic.version = 11 : i64} {
  func.func @_lora_linear_kernel(%arg0: i32, %arg1: i32, %arg2: i32, %arg3: memref<16x128xbf16, #tpu.memory_space<vmem>>, %arg4: memref<128x128xbf16, #tpu.memory_space<vmem>>, %arg5: memref<1x128xf32, #tpu.memory_space<vmem>>, %arg6: memref<16x128xbf16, #tpu.memory_space<vmem>>, %arg7: memref<128x128xbf16, #tpu.memory_space<vmem>>, %arg8: memref<16x128xf32, #tpu.memory_space<vmem>>, %arg9: memref<16x128xf32, #tpu.memory_space<vmem>>) attributes {dimension_semantics = [#tpu.dimension_semantics<parallel>, #tpu.dimension_semantics<parallel>, #tpu.dimension_semantics<arbitrary>], iteration_bounds = array<i64: 1, 1, 1>, scalar_prefetch = 0 : i64, scratch_operands = 1 : i64, tpu.core_type = #tpu.core_type<tc>, window_params = [{transform_indices = @transform_0, window_bounds = array<i64: 16, 128>}, {transform_indices = @transform_1, window_bounds = array<i64: 128, 128>}, {transform_indices = @transform_2, window_bounds = array<i64: 1, 128>}, {transform_indices = @transform_3, window_bounds = array<i64: 16, 128>}, {transform_indices = @transform_4, window_bounds = array<i64: 128, 128>}, {transform_indices = @transform_5, window_bounds = array<i64: 16, 128>}]} {
    %c0_i32 = arith.constant 0 : i32
    %0 = arith.cmpi eq, %arg2, %c0_i32 : i32
    %1 = arith.extui %0 : i1 to i32
    %c0_i32_0 = arith.constant 0 : i32
    %2 = arith.cmpi ne, %1, %c0_i32_0 : i32
    scf.if %2 {
      %c0_10 = arith.constant 0 : index
      %c0_11 = arith.constant 0 : index
      %12 = vector.load %arg5[%c0_10, %c0_11] : memref<1x128xf32, #tpu.memory_space<vmem>>, vector<1x128xf32>
      %13 = vector.shape_cast %12 : vector<1x128xf32> to vector<1x128xf32>
      %14 = vector.broadcast %13 : vector<1x128xf32> to vector<16x128xf32>
      %c0_12 = arith.constant 0 : index
      %c0_13 = arith.constant 0 : index
      %15 = vector.load %arg9[%c0_12, %c0_13] : memref<16x128xf32, #tpu.memory_space<vmem>>, vector<16x128xf32>
      tpu.vector_store %arg9[%c0_12, %c0_13], %14 {strides = array<i32>} : memref<16x128xf32, #tpu.memory_space<vmem>>, vector<16x128xf32>,
    } else {
    }
    %c0 = arith.constant 0 : index
    %c0_1 = arith.constant 0 : index
    %3 = vector.load %arg9[%c0, %c0_1] : memref<16x128xf32, #tpu.memory_space<vmem>>, vector<16x128xf32>
    %c0_2 = arith.constant 0 : index
    %c0_3 = arith.constant 0 : index
    %4 = vector.load %arg3[%c0_2, %c0_3] : memref<16x128xbf16, #tpu.memory_space<vmem>>, vector<16x128xbf16>
    %c0_4 = arith.constant 0 : index
    %c0_5 = arith.constant 0 : index
    %5 = vector.load %arg4[%c0_4, %c0_5] : memref<128x128xbf16, #tpu.memory_space<vmem>>, vector<128x128xbf16>
    %cst = arith.constant dense<0.000000e+00> : vector<16x128xf32>
    %6 = tpu.matmul %4, %5, %cst {dimension_numbers = #tpu.dot_dimension_numbers<[1], [1], [0], [0], [0, 0, 1, 0], [], []>} : vector<16x128xbf16>, vector<128x128xbf16>, vector<16x128xf32> -> vector<16x128xf32>
    %7 = arith.addf %3, %6 : vector<16x128xf32>
    %c0_6 = arith.constant 0 : index
    %c0_7 = arith.constant 0 : index
    %8 = vector.load %arg9[%c0_6, %c0_7] : memref<16x128xf32, #tpu.memory_space<vmem>>, vector<16x128xf32>
    tpu.vector_store %arg9[%c0_6, %c0_7], %7 {strides = array<i32>} : memref<16x128xf32, #tpu.memory_space<vmem>>, vector<16x128xf32>,
    %c0_i32_8 = arith.constant 0 : i32
    %9 = arith.cmpi eq, %arg2, %c0_i32_8 : i32
    %10 = arith.extui %9 : i1 to i32
    %c0_i32_9 = arith.constant 0 : i32
    %11 = arith.cmpi ne, %10, %c0_i32_9 : i32
    scf.if %11 {
      %c0_10 = arith.constant 0 : index
      %c0_11 = arith.constant 0 : index
      %12 = vector.load %arg6[%c0_10, %c0_11] : memref<16x128xbf16, #tpu.memory_space<vmem>>, vector<16x128xbf16>
      %c0_12 = arith.constant 0 : index
      %c0_13 = arith.constant 0 : index
      %13 = vector.load %arg7[%c0_12, %c0_13] : memref<128x128xbf16, #tpu.memory_space<vmem>>, vector<128x128xbf16>
      %cst_14 = arith.constant dense<0.000000e+00> : vector<16x128xf32>
      %14 = tpu.matmul %12, %13, %cst_14 {dimension_numbers = #tpu.dot_dimension_numbers<[1], [1], [0], [0], [0, 0, 1, 0], [], []>} : vector<16x128xbf16>, vector<128x128xbf16>, vector<16x128xf32> -> vector<16x128xf32>
      %c0_15 = arith.constant 0 : index
      %c0_16 = arith.constant 0 : index
      %15 = vector.load %arg9[%c0_15, %c0_16] : memref<16x128xf32, #tpu.memory_space<vmem>>, vector<16x128xf32>
      %16 = arith.addf %15, %14 : vector<16x128xf32>
      %c0_17 = arith.constant 0 : index
      %c0_18 = arith.constant 0 : index
      %17 = vector.load %arg8[%c0_17, %c0_18] : memref<16x128xf32, #tpu.memory_space<vmem>>, vector<16x128xf32>
      tpu.vector_store %arg8[%c0_17, %c0_18], %16 {strides = array<i32>} : memref<16x128xf32, #tpu.memory_space<vmem>>, vector<16x128xf32>,
    } else {
    }
    return
  }
  func.func @transform_0(%arg0: i32, %arg1: i32, %arg2: i32) -> (i32, i32) {
    %c0_i32 = arith.constant 0 : i32
    return %arg0, %arg2 : i32, i32
  }
  func.func @transform_1(%arg0: i32, %arg1: i32, %arg2: i32) -> (i32, i32) {
    %c0_i32 = arith.constant 0 : i32
    return %arg1, %arg2 : i32, i32
  }
  func.func @transform_2(%arg0: i32, %arg1: i32, %arg2: i32) -> (i32, i32) {
    %c0_i32 = arith.constant 0 : i32
    %c0_i32_0 = arith.constant 0 : i32
    return %c0_i32, %arg1 : i32, i32
  }
  func.func @transform_3(%arg0: i32, %arg1: i32, %arg2: i32) -> (i32, i32) {
    %c0_i32 = arith.constant 0 : i32
    %c0_i32_0 = arith.constant 0 : i32
    return %arg0, %c0_i32 : i32, i32
  }
  func.func @transform_4(%arg0: i32, %arg1: i32, %arg2: i32) -> (i32, i32) {
    %c0_i32 = arith.constant 0 : i32
    %c0_i32_0 = arith.constant 0 : i32
    return %arg1, %c0_i32 : i32, i32
  }
  func.func @transform_5(%arg0: i32, %arg1: i32, %arg2: i32) -> (i32, i32) {
    %c0_i32 = arith.constant 0 : i32
    return %arg0, %arg1 : i32, i32
  }
}

</mosaic_0001>

<bundles_post_ra>
// kernel: tpu_custom_call.1
= control target key start
LH: loop header
LB: loop body
LE: loop exit
PB: predicated region body
PF: predicated region fallthrough
CT: control target
= control target key end

     0   :  { %10 = vsyncpa [#allocation4], 0  ;;  %s648_s0 = inlined_call_operand.hbm [shape: bf16[16,128], index: 0, kind: input, shape index: {}]   ;;  %s649_s1 = inlined_call_operand.hbm [shape: bf16[128,128], index: 1, kind: input, shape index: {}]   ;;  %s650_s2 = inlined_call_operand.vmem [shape: f32[1,128], index: 2, kind: input, shape index: {}]   ;;  %s651_s3 = inlined_call_operand.vmem [shape: bf16[16,128], index: 3, kind: input, shape index: {}]   ;;  %s652_s4 = inlined_call_operand.hbm [shape: bf16[128,128], index: 4, kind: input, shape index: {}]   ;;  %s653_s5 = inlined_call_operand.hbm [shape: f32[16,128], index: 5, kind: output, shape index: {}]  }
   0x1   :  { %11 = vsyncpa [#allocation7], 0 }
   0x2   :  { %12 = vsyncpa [#allocation5], 0  ;;  %s538_s18 = smov [#allocation6]   ;;  %s539_s20 = smov [#allocation3]  }
   0x3   :  { %s30_s19 = sshll.u32 %s538_s18, 4  ;;  %s18_s21 = sshll.u32 %s539_s20, 4  ;;  %s31_s19 = int_to_ptr.vmem [resolvable:$true] %s30_s19  ;;  %s578_s21 = int_to_ptr.vmem [resolvable:$true] %s18_s21 }
   0x4   :  { %s444_s24 = scalar_lea.hbm %s649_s1, 1024 }
   0x5   :  { %p445_p0 = scmp.ne.s32.totalorder %s649_s1, %s444_s24  ;;  %p448_p1 = scmp.lt.u32.totalorder %s444_s24, %s649_s1 }
   0x7   :  { %p450_p2 = pnand %p448_p1, %p445_p0 }
   0x9   :  { %453 = shalt.err (!%p450_p2)
}
   0xa   :  { %s454_s29 = scalar_lea.vmem %s31_s19, 1024  ;;  %p459_p4 = scmp.lt.s32.totalorder %s31_s19, %s31_s19 }
   0xb   :  { %p455_p3 = scmp.ne.s32.totalorder %s31_s19, %s454_s29  ;;  %p460_p5 = scmp.lt.s32.totalorder %s454_s29, %s454_s29 }
   0xd   :  { %p461_p6 = por %p460_p5, %p459_p4 }
   0xf   :  { %p462_p7 = pnand %p461_p6, %p455_p3 }
  0x11   :  { %465 = shalt.err (!%p462_p7)
}
  0x12   :  { %s540_s30 = smov 64   ;;  %s541_s6 = smov 4  }
  0x13   :  { %36 = dma.hbm_to_vmem [thread:$0]  %s649_s1, 1024, %s31_s19, [#allocation7], %s540_s30, %s540_s30, %s541_s6  }
  0x14   :  { %s466_s11 = scalar_lea.hbm %s648_s0, 128 }
  0x15   :  { %p467_p8 = scmp.ne.s32.totalorder %s648_s0, %s466_s11  ;;  %p470_p9 = scmp.lt.u32.totalorder %s466_s11, %s648_s0 }
  0x17   :  { %p472_p10 = pnand %p470_p9, %p467_p8 }
  0x19   :  { %475 = shalt.err (!%p472_p10)
}
  0x1a   :  { %s476_s16 = scalar_lea.vmem %s578_s21, 128  ;;  %p481_p12 = scmp.lt.s32.totalorder %s578_s21, %s578_s21 }
  0x1b   :  { %p477_p11 = scmp.ne.s32.totalorder %s578_s21, %s476_s16  ;;  %p482_p13 = scmp.lt.s32.totalorder %s476_s16, %s476_s16 }
  0x1d   :  { %p483_p0 = por %p482_p13, %p481_p12 }
  0x1f   :  { %p484_p1 = pnand %p483_p0, %p477_p11 }
  0x21   :  { %487 = shalt.err (!%p484_p1)
}
  0x22   :  { %24 = dma.hbm_to_vmem [thread:$0]  %s648_s0, 128, %s578_s21, [#allocation4], %s540_s30, %s540_s30, %s541_s6  }
  0x23   :  { %s542_s18 = smov [#allocation8]   ;;  %s488_s23 = scalar_lea.hbm %s652_s4, 1024 }
  0x24   :  { %s46_s19 = sshll.u32 %s542_s18, 4  ;;  %p489_p2 = scmp.ne.s32.totalorder %s652_s4, %s488_s23  ;;  %s47_s19 = int_to_ptr.vmem [resolvable:$true] %s46_s19 }
  0x25   :  { %p492_p3 = scmp.lt.u32.totalorder %s488_s23, %s652_s4 }
  0x27   :  { %p494_p4 = pnand %p492_p3, %p489_p2 }
  0x29   :  { %497 = shalt.err (!%p494_p4)
}
  0x2a   :  { %s498_s28 = scalar_lea.vmem %s47_s19, 1024  ;;  %p503_p6 = scmp.lt.s32.totalorder %s47_s19, %s47_s19 }
  0x2b   :  { %p499_p5 = scmp.ne.s32.totalorder %s47_s19, %s498_s28  ;;  %p504_p7 = scmp.lt.s32.totalorder %s498_s28, %s498_s28 }
  0x2d   :  { %p505_p8 = por %p504_p7, %p503_p6 }
  0x2f   :  { %p506_p9 = pnand %p505_p8, %p499_p5 }
  0x31   :  { %509 = shalt.err (!%p506_p9)
}
  0x32   :  { %52 = dma.hbm_to_vmem [thread:$0]  %s652_s4, 1024, %s47_s19, [#allocation7], %s540_s30, %s540_s30, %s541_s6  }
  0x33   :  { %532 = dma.done.wait [#allocation4], 128  }
  0x34   :  { %533 = vsyncadd [#allocation4], 4294967168 }
  0x35   :  { %534 = dma.done.wait [#allocation7], 2048  }
  0x36   :  { %535 = vsyncadd [#allocation7], 4294965248  ;;  %v543_v0 = vmov 0.0   ;;  %vm544_vm0 = vmmov 0   ;;  %v426_v1 = vld [vmem:[#allocation6] sm:$0xff]   ;;  %v428_v3 = vld [vmem:[#allocation6 + $0x8] sm:$0xff]  }
  0x37   :  { %372 = vmatprep.subr.bf16.mxu1 %v543_v0  ;;  %392 = vmatprep.subr.bf16.mxu0 %v543_v0  ;;  %v427_v2 = vld [vmem:[#allocation8] sm:$0xff]   ;;  %v429_v4 = vld [vmem:[#allocation8 + $0x8] sm:$0xff]   ;;  %v430_v5 = vld [vmem:[#allocation6 + $0x10] sm:$0xff]   ;;  %s545_s7 = smov [#allocation9]  }
  0x38   :  { %388 = vmatprep.mubr.msk.bf16.mxu1 %vm544_vm0, %v543_v0  ;;  %408 = vmatprep.mubr.msk.bf16.mxu0 %vm544_vm0, %v543_v0  ;;  %v431_v6 = vld [vmem:[#allocation8 + $0x10] sm:$0xff]   ;;  %v432_v7 = vld [vmem:[#allocation6 + $0x18] sm:$0xff]   ;;  %v434_v9 = vld [vmem:[#allocation6 + $0x20] sm:$0xff]   ;;  %s322_s8 = sshll.u32 %s545_s7, 4  ;;  %s323_s8 = int_to_ptr.vmem [resolvable:$true] %s322_s8 }
  0x39   :  { %373 = vmatpush3.bf16.xpose.msra.mxu1 %v426_v1  ;;  %393 = vmatpush3.bf16.xpose.msra.mxu0 %v427_v2  ;;  %v433_v8 = vld [vmem:[#allocation8 + $0x18] sm:$0xff]   ;;  %v435_v10 = vld [vmem:[#allocation8 + $0x20] sm:$0xff]   ;;  %v436_v11 = vld [vmem:[#allocation6 + $0x28] sm:$0xff]   ;;  %p515_p11 = scmp.lt.s32.totalorder %s323_s8, %s323_s8 }
  0x3a   :  { %374 = vmatprep.subr.bf16.mxu1 %v543_v0  ;;  %394 = vmatprep.subr.bf16.mxu0 %v543_v0  ;;  %v437_v12 = vld [vmem:[#allocation8 + $0x28] sm:$0xff]   ;;  %v438_v13 = vld [vmem:[#allocation6 + $0x30] sm:$0xff]   ;;  %v440_v15 = vld [vmem:[#allocation6 + $0x38] sm:$0xff]  }
  0x3b   :  { %v439_v14 = vld [vmem:[#allocation8 + $0x30] sm:$0xff]   ;;  %v441_v16 = vld [vmem:[#allocation8 + $0x38] sm:$0xff]  }
  0x3c   :  { %v442_v17 = vld [vmem:[#allocation3] sm:$0xff]  }
  0x3d   :  { %v443_v18 = vld [vmem:[%s651_s3] sm:$0xff]   ;;  %s510_s3 = scalar_lea.vmem %s323_s8, 256 }
  0x3e   :  { %v335_v19 = vld [vmem:[%s650_s2] ss:$0 sm:$0xff]  ;;  %p511_p10 = scmp.ne.s32.totalorder %s323_s8, %s510_s3  ;;  %p516_p12 = scmp.lt.s32.totalorder %s510_s3, %s510_s3 }
  0x40   :  { %p517_p13 = por %p516_p12, %p515_p11 }
  0x41   :  { %375 = vmatpush3.bf16.xpose.msra.mxu1 %v428_v3  ;;  %395 = vmatpush3.bf16.xpose.msra.mxu0 %v429_v4 }
  0x42   :  { %376 = vmatprep.subr.bf16.mxu1 %v543_v0  ;;  %396 = vmatprep.subr.bf16.mxu0 %v543_v0  ;;  %p518_p0 = pnand %p517_p13, %p511_p10 }
  0x49   :  { %377 = vmatpush3.bf16.xpose.msra.mxu1 %v430_v5  ;;  %397 = vmatpush3.bf16.xpose.msra.mxu0 %v431_v6 }
  0x4a   :  { %378 = vmatprep.subr.bf16.mxu1 %v543_v0  ;;  %398 = vmatprep.subr.bf16.mxu0 %v543_v0 }
  0x51   :  { %379 = vmatpush3.bf16.xpose.msra.mxu1 %v432_v7  ;;  %399 = vmatpush3.bf16.xpose.msra.mxu0 %v433_v8 }
  0x52   :  { %380 = vmatprep.subr.bf16.mxu1 %v543_v0  ;;  %400 = vmatprep.subr.bf16.mxu0 %v543_v0 }
  0x59   :  { %381 = vmatpush3.bf16.xpose.msra.mxu1 %v434_v9  ;;  %401 = vmatpush3.bf16.xpose.msra.mxu0 %v435_v10 }
  0x5a   :  { %382 = vmatprep.subr.bf16.mxu1 %v543_v0  ;;  %402 = vmatprep.subr.bf16.mxu0 %v543_v0 }
  0x61   :  { %383 = vmatpush3.bf16.xpose.msra.mxu1 %v436_v11  ;;  %403 = vmatpush3.bf16.xpose.msra.mxu0 %v437_v12 }
  0x62   :  { %384 = vmatprep.subr.bf16.mxu1 %v543_v0  ;;  %404 = vmatprep.subr.bf16.mxu0 %v543_v0 }
  0x69   :  { %385 = vmatpush3.bf16.xpose.msra.mxu1 %v438_v13  ;;  %405 = vmatpush3.bf16.xpose.msra.mxu0 %v439_v14 }
  0x6a   :  { %386 = vmatprep.subr.bf16.mxu1 %v543_v0  ;;  %406 = vmatprep.subr.bf16.mxu0 %v543_v0 }
  0x71   :  { %387 = vmatpush3.bf16.xpose.msra.mxu1 %v440_v15  ;;  %407 = vmatpush3.bf16.xpose.msra.mxu0 %v441_v16 }
  0x78   :  { %389 = vmatmul.mubr.bf16.vlgmr.msra.gmra.mrb[0].mxu1 %v442_v17  ;;  %409 = vmatmul.mubr.bf16.vlgmr.msra.gmra.mrb[0].mxu0 %v443_v18 }
 0x14b   :  { %v184_v20 = vpop.f32.mrb[0].mxu1  ;;  %v304_v22 = vpop.f32.mrb[0].mxu0 }
 0x14c   :  { %v191_v21 = vadd.f32 %v335_v19, %v184_v20  ;;  %v390_v23 = vpop.f32.mrb[1].mxu1  ;;  %v410_v24 = vpop.f32.mrb[1].mxu0 }
 0x14d   :  { %v187_v25 = vpop.f32.mrb[2].mxu1  ;;  %v307_v28 = vpop.f32.mrb[2].mxu0 }
 0x14e   :  { %v313_v26 = vadd.f32 %v304_v22, %v191_v21  ;;  %v192_v27 = vadd.f32 %v335_v19, %v187_v25  ;;  %v391_v29 = vpop.f32.mrb[3].mxu1  ;;  %v411_v30 = vpop.f32.mrb[3].mxu0 }
 0x150   :  { %315 = vst [vmem:[#allocation9] sm:$0xff] %v313_v26  ;;  %v314_v31 = vadd.f32 %v307_v28, %v192_v27 }
 0x152   :  { %316 = vst [vmem:[#allocation9 + $0x8] sm:$0xff] %v314_v31 }
 0x153   :  { %521 = shalt.err (!%p518_p0)
}
 0x154   :  { %s522_s10 = scalar_lea.hbm %s653_s5, 256 }
 0x155   :  { %p523_p1 = scmp.ne.s32.totalorder %s653_s5, %s522_s10  ;;  %p526_p2 = scmp.lt.u32.totalorder %s522_s10, %s653_s5 }
 0x157   :  { %p528_p3 = pnand %p526_p2, %p523_p1 }
 0x159   :  { %531 = shalt.err (!%p528_p3)
}
 0x15a   :  { %s546_s15 = smov 128   ;;  %s547_s16 = smov 8  }
 0x15b   :  { %328 = dma.vmem_to_hbm [thread:$0]  %s323_s8, 256, %s653_s5, [#allocation5], %s546_s15, %s546_s15, %s547_s16  }
 0x15c   :  { %536 = dma.done.wait [#allocation5], 256  }
 0x15d   :  { %537 = vsyncadd [#allocation5], 4294967040 }
 0x15e   :  { %332 = vsyncpa [#allocation4], 1 }
 0x15f   :  { %333 = vsyncpa [#allocation7], 1 }
 0x160   :  { %334 = vsyncpa [#allocation5], 1 }

</bundles_post_ra>
